<compile_context>
chip_gen: v6e
topology: v6e:2x2x1
jax: 0.10.0
libtpu: 0.0.40
codegen_flags: <defaults>
</compile_context>

<pallas_src>
import functools

import jax
import jax.numpy as jnp
from jax.experimental import pallas as pl
from jax.experimental.pallas import tpu as pltpu


def _mha_core_kernel(pq_ref, pk_ref, pv_ref, o_ref, *, h):
    """Fused multi-head attention core for one query tile.

    pq_ref: (h, B, bq, dk)  head-major projected queries (1/sqrt(key_dim) folded in)
    pk_ref: (h, B, Tk, dk)  head-major projected keys
    pv_ref: (h, B, Tk, dk)  head-major projected values
    o_ref:  (B, bq, num_units)  output tile; head hi owns lanes [hi*dk, (hi+1)*dk)
    """
    dk = pq_ref.shape[-1]

    # Static, unrolled head loop: leading-axis indexing only (no lane slices,
    # no concat).  MXU is nearly idle at dk=4 — this path is VPU/EUP bound,
    # so the per-head "matmuls" being tiny is fine (review item #4).
    for hi in range(h):
        qh = pq_ref[hi]          # (B, bq, dk)
        kh = pk_ref[hi]          # (B, Tk, dk)
        vh = pv_ref[hi]          # (B, Tk, dk)

        # Scores: batched q @ k^T contracting dk; f32 accumulation.
        s = jnp.einsum('bqd,bkd->bqk', qh, kh,
                       preferred_element_type=jnp.float32)   # (B, bq, Tk)

        # Numerically stable softmax numerator (exp on the EUP slot), f32.
        s = s - jnp.max(s, axis=-1, keepdims=True)
        p = jnp.exp(s)

        # Unnormalized output, then flash-style late divide: the normalizing
        # multiply touches (bq, dk) elements instead of (bq, Tk).
        o = jnp.einsum('bqk,bkd->bqd', p, vh,
                       preferred_element_type=jnp.float32)    # (B, bq, dk)
        inv = pl.reciprocal(jnp.sum(p, axis=-1, keepdims=True), approx=True)
        o_ref[:, :, hi * dk:(hi + 1) * dk] = (o * inv).astype(o_ref.dtype)


def multi_head_attention(query, keys, wq, wk, wv, *, num_units, h, key_dim,
                         block_q=None, compute_dtype=None):
    """Pallas implementation of MultiHeadAttention.forward (is_masked=False).

    query: (B, Tq, query_dim)
    keys:  (B, Tk, key_dim)
    wq/wk/wv: (num_units, query_dim)  -- PyTorch nn.Linear weight layout.
    returns: (B, Tq, num_units) float32, same layout as the PyTorch output.
    """
    B, Tq, Dq = query.shape
    _, Tk, Dk = keys.shape
    if num_units % h != 0:
        raise ValueError('num_units must be divisible by h')
    dk = num_units // h
    scale = 1.0 / float(key_dim) ** 0.5

    # Fold the attention scale into Wq once (scores are linear in Wq).
    wq_scaled = wq * jnp.asarray(scale, wq.dtype)

    # ---- Projections in the wrapper (plain XLA GEMMs, M = B*T is the only
    # small dim) — no K/V re-projection per query tile inside the kernel. ----
    pq = jnp.einsum('btd,nd->btn', query, wq_scaled)   # (B, Tq, NU)
    pk = jnp.einsum('btd,nd->btn', keys, wk)           # (B, Tk, NU)
    pv = jnp.einsum('btd,nd->btn', keys, wv)           # (B, Tk, NU)

    # ---- Split heads ONCE, in the wrapper, into head-major layout so the
    # kernel only ever indexes the leading head axis. ----
    def to_head_major(x, t):
        return x.reshape(B, t, h, dk).transpose(2, 0, 1, 3)   # (h, B, T, dk)

    pq_h = to_head_major(pq, Tq)
    pk_h = to_head_major(pk, Tk)
    pv_h = to_head_major(pv, Tk)

    if compute_dtype is not None:
        # Cast in the wrapper (halves DMA bytes for bf16); the kernel keeps all
        # softmax / elementwise math and accumulation in f32 (v5e-friendly).
        pq_h = pq_h.astype(compute_dtype)
        pk_h = pk_h.astype(compute_dtype)
        pv_h = pv_h.astype(compute_dtype)

    # ---- Query tiling.  Default: one fat grid step (tiny shapes ⇒ per-step
    # overhead dominates).  For v7x (2 TCs) pass block_q=Tq//2 to get >=2
    # parallel grid points when B is small. ----
    if block_q is None or block_q >= Tq:
        block_q = Tq
    if Tq % block_q != 0:
        raise ValueError(f'block_q={block_q} must divide Tq={Tq}')
    if block_q != Tq and block_q % 8 != 0:
        raise ValueError('block_q must be a multiple of 8 when tiling Tq')
    nq = Tq // block_q

    in_itemsize = jnp.dtype(pq_h.dtype).itemsize
    cost = pl.CostEstimate(
        flops=int(4 * B * h * Tq * Tk * dk + 4 * B * h * Tq * Tk),
        transcendentals=int(B * h * Tq * Tk),
        bytes_accessed=int((pq_h.size + pk_h.size + pv_h.size) * in_itemsize
                           + B * Tq * num_units * 4),
    )

    return pl.pallas_call(
        functools.partial(_mha_core_kernel, h=h),
        out_shape=jax.ShapeDtypeStruct((B, Tq, num_units), jnp.float32),
        grid_spec=pltpu.PrefetchScalarGridSpec(
            num_scalar_prefetch=0,
            grid=(nq,),
            in_specs=[
                # queries: vary with the q-tile axis.
                pl.BlockSpec((h, B, block_q, dk), lambda qi: (0, 0, qi, 0)),
                # keys/values: constant index map -> DMA'd once, no re-fetch
                # across query tiles.
                pl.BlockSpec((h, B, Tk, dk), lambda qi: (0, 0, 0, 0)),
                pl.BlockSpec((h, B, Tk, dk), lambda qi: (0, 0, 0, 0)),
            ],
            out_specs=pl.BlockSpec((B, block_q, num_units),
                                   lambda qi: (0, qi, 0)),
        ),
        compiler_params=pltpu.CompilerParams(
            dimension_semantics=("parallel",)),
        cost_estimate=cost,
    )(pq_h, pk_h, pv_h)


def _reference(query, keys, wq, wk, wv, *, num_units, h, key_dim):
    """Pure-JAX re-implementation of the PyTorch forward for validation."""
    pq = query @ wq.T
    pk = keys @ wk.T
    pv = keys @ wv.T
    dk = num_units // h

    def split_cat(x):  # split along dim 2 into h chunks, concat along dim 0
        chunks = [x[:, :, i * dk:(i + 1) * dk] for i in range(h)]
        return jnp.concatenate(chunks, axis=0)

    pq, pk, pv = split_cat(pq), split_cat(pk), split_cat(pv)
    att = jnp.matmul(pq, jnp.swapaxes(pk, 1, 2)) / float(key_dim) ** 0.5
    att = jax.nn.softmax(att, axis=-1)
    att = jnp.matmul(att, pv)
    B = query.shape[0]
    chunks = [att[i * B:(i + 1) * B] for i in range(h)]
    return jnp.concatenate(chunks, axis=2)


if __name__ == "__main__":
    # Module config: query_dim == key_dim == num_units (required by __init__).
    B, Tq, Tk = 2, 8, 8
    num_units = 32
    query_dim = key_dim = num_units
    h = 8

    key = jax.random.PRNGKey(0)
    k_q, k_k, k_wq, k_wk, k_wv = jax.random.split(key, 5)

    query = jax.random.normal(k_q, (B, Tq, query_dim), dtype=jnp.float32)
    keys = jax.random.normal(k_k, (B, Tk, key_dim), dtype=jnp.float32)

    # Deterministic parameter init (nn.Linear-style uniform scaling).
    bound = 1.0 / (query_dim ** 0.5)
    wq = jax.random.uniform(k_wq, (num_units, query_dim), jnp.float32, -bound, bound)
    wk = jax.random.uniform(k_wk, (num_units, key_dim), jnp.float32, -bound, bound)
    wv = jax.random.uniform(k_wv, (num_units, key_dim), jnp.float32, -bound, bound)

    out = multi_head_attention(query, keys, wq, wk, wv,
                               num_units=num_units, h=h, key_dim=key_dim)
    out = jax.block_until_ready(out)

    ref = _reference(query, keys, wq, wk, wv,
                     num_units=num_units, h=h, key_dim=key_dim)
    assert out.shape == (B, Tq, num_units)
    # Tolerance loosened (vs 1e-5) for the approx-reciprocal softmax denominator.
    assert jnp.allclose(out, ref, atol=1e-2, rtol=1e-2), "mismatch vs reference"

    print("KERNEL_OK")
</pallas_src>

<mosaic_0001>
module attributes {stable_mosaic.version = 11 : i64} {
  func.func @_mha_core_kernel(%arg0: i32, %arg1: memref<8x2x8x4xf32, #tpu.memory_space<vmem>>, %arg2: memref<8x2x8x4xf32, #tpu.memory_space<vmem>>, %arg3: memref<8x2x8x4xf32, #tpu.memory_space<vmem>>, %arg4: memref<2x8x32xf32, #tpu.memory_space<vmem>>) attributes {dimension_semantics = [#tpu.dimension_semantics<parallel>], iteration_bounds = array<i64: 1>, scalar_prefetch = 0 : i64, scratch_operands = 0 : i64, tpu.core_type = #tpu.core_type<tc>, window_params = [{transform_indices = @transform_0, window_bounds = array<i64: 8, 2, 8, 4>}, {pipeline_mode = #tpu.pipeline_mode<synchronous>, transform_indices = @transform_1, window_bounds = array<i64: 8, 2, 8, 4>}, {pipeline_mode = #tpu.pipeline_mode<synchronous>, transform_indices = @transform_2, window_bounds = array<i64: 8, 2, 8, 4>}, {transform_indices = @transform_3, window_bounds = array<i64: 2, 8, 32>}]} {
    %c0 = arith.constant 0 : index
    %c0_0 = arith.constant 0 : index
    %c0_1 = arith.constant 0 : index
    %c0_2 = arith.constant 0 : index
    %0 = vector.load %arg1[%c0, %c0_0, %c0_1, %c0_2] : memref<8x2x8x4xf32, #tpu.memory_space<vmem>>, vector<1x2x8x4xf32>
    %1 = vector.shape_cast %0 : vector<1x2x8x4xf32> to vector<2x8x4xf32>
    %c0_3 = arith.constant 0 : index
    %c0_4 = arith.constant 0 : index
    %c0_5 = arith.constant 0 : index
    %c0_6 = arith.constant 0 : index
    %2 = vector.load %arg2[%c0_3, %c0_4, %c0_5, %c0_6] : memref<8x2x8x4xf32, #tpu.memory_space<vmem>>, vector<1x2x8x4xf32>
    %3 = vector.shape_cast %2 : vector<1x2x8x4xf32> to vector<2x8x4xf32>
    %c0_7 = arith.constant 0 : index
    %c0_8 = arith.constant 0 : index
    %c0_9 = arith.constant 0 : index
    %c0_10 = arith.constant 0 : index
    %4 = vector.load %arg3[%c0_7, %c0_8, %c0_9, %c0_10] : memref<8x2x8x4xf32, #tpu.memory_space<vmem>>, vector<1x2x8x4xf32>
    %5 = vector.shape_cast %4 : vector<1x2x8x4xf32> to vector<2x8x4xf32>
    "tpu.trace_start"() <{level = 10 : i32, message = "bqd,bkd->bqk"}> : () -> ()
    %cst = arith.constant dense<0.000000e+00> : vector<2x8x8xf32>
    %6 = tpu.matmul %1, %3, %cst {dimension_numbers = #tpu.dot_dimension_numbers<[2], [2], [1], [1], [0, 0, 0, 1, 1, 1], [0], [0]>} : vector<2x8x4xf32>, vector<2x8x4xf32>, vector<2x8x8xf32> -> vector<2x8x8xf32>
    "tpu.trace_stop"() : () -> ()
    %cst_11 = arith.constant dense<0xFF800000> : vector<2x8xf32>
    %7 = vector.multi_reduction <maximumf>, %6, %cst_11 [2] : vector<2x8x8xf32> to vector<2x8xf32>
    %8 = vector.shape_cast %7 : vector<2x8xf32> to vector<2x8x1xf32>
    %9 = vector.broadcast %8 : vector<2x8x1xf32> to vector<2x8x8xf32>
    %10 = arith.subf %6, %9 : vector<2x8x8xf32>
    %11 = math.exp %10 : vector<2x8x8xf32>
    "tpu.trace_start"() <{level = 10 : i32, message = "bqk,bkd->bqd"}> : () -> ()
    %cst_12 = arith.constant dense<0.000000e+00> : vector<2x8x4xf32>
    %12 = tpu.matmul %11, %5, %cst_12 {dimension_numbers = #tpu.dot_dimension_numbers<[2], [1], [1], [2], [0, 0, 0, 1, 1, 2], [0], [0]>} : vector<2x8x8xf32>, vector<2x8x4xf32>, vector<2x8x4xf32> -> vector<2x8x4xf32>
    "tpu.trace_stop"() : () -> ()
    %cst_13 = arith.constant dense<0.000000e+00> : vector<2x8xf32>
    %13 = vector.multi_reduction <add>, %11, %cst_13 [2] : vector<2x8x8xf32> to vector<2x8xf32>
    %14 = vector.shape_cast %13 : vector<2x8xf32> to vector<2x8x1xf32>
    %15 = tpu.reciprocal %14 {approx = true} : vector<2x8x1xf32> -> vector<2x8x1xf32>
    %16 = vector.broadcast %15 : vector<2x8x1xf32> to vector<2x8x4xf32>
    %17 = arith.mulf %12, %16 : vector<2x8x4xf32>
    %c0_14 = arith.constant 0 : index
    %c0_15 = arith.constant 0 : index
    %c0_16 = arith.constant 0 : index
    %18 = vector.load %arg4[%c0_14, %c0_15, %c0_16] : memref<2x8x32xf32, #tpu.memory_space<vmem>>, vector<2x8x4xf32>
    tpu.vector_store %arg4[%c0_14, %c0_15, %c0_16], %17 {strides = array<i32>} : memref<2x8x32xf32, #tpu.memory_space<vmem>>, vector<2x8x4xf32>,
    %c1 = arith.constant 1 : index
    %c0_17 = arith.constant 0 : index
    %c0_18 = arith.constant 0 : index
    %c0_19 = arith.constant 0 : index
    %19 = vector.load %arg1[%c1, %c0_17, %c0_18, %c0_19] : memref<8x2x8x4xf32, #tpu.memory_space<vmem>>, vector<1x2x8x4xf32>
    %20 = vector.shape_cast %19 : vector<1x2x8x4xf32> to vector<2x8x4xf32>
    %c1_20 = arith.constant 1 : index
    %c0_21 = arith.constant 0 : index
    %c0_22 = arith.constant 0 : index
    %c0_23 = arith.constant 0 : index
    %21 = vector.load %arg2[%c1_20, %c0_21, %c0_22, %c0_23] : memref<8x2x8x4xf32, #tpu.memory_space<vmem>>, vector<1x2x8x4xf32>
    %22 = vector.shape_cast %21 : vector<1x2x8x4xf32> to vector<2x8x4xf32>
    %c1_24 = arith.constant 1 : index
    %c0_25 = arith.constant 0 : index
    %c0_26 = arith.constant 0 : index
    %c0_27 = arith.constant 0 : index
    %23 = vector.load %arg3[%c1_24, %c0_25, %c0_26, %c0_27] : memref<8x2x8x4xf32, #tpu.memory_space<vmem>>, vector<1x2x8x4xf32>
    %24 = vector.shape_cast %23 : vector<1x2x8x4xf32> to vector<2x8x4xf32>
    "tpu.trace_start"() <{level = 10 : i32, message = "bqd,bkd->bqk"}> : () -> ()
    %cst_28 = arith.constant dense<0.000000e+00> : vector<2x8x8xf32>
    %25 = tpu.matmul %20, %22, %cst_28 {dimension_numbers = #tpu.dot_dimension_numbers<[2], [2], [1], [1], [0, 0, 0, 1, 1, 1], [0], [0]>} : vector<2x8x4xf32>, vector<2x8x4xf32>, vector<2x8x8xf32> -> vector<2x8x8xf32>
    "tpu.trace_stop"() : () -> ()
    %cst_29 = arith.constant dense<0xFF800000> : vector<2x8xf32>
    %26 = vector.multi_reduction <maximumf>, %25, %cst_29 [2] : vector<2x8x8xf32> to vector<2x8xf32>
    %27 = vector.shape_cast %26 : vector<2x8xf32> to vector<2x8x1xf32>
    %28 = vector.broadcast %27 : vector<2x8x1xf32> to vector<2x8x8xf32>
    %29 = arith.subf %25, %28 : vector<2x8x8xf32>
    %30 = math.exp %29 : vector<2x8x8xf32>
    "tpu.trace_start"() <{level = 10 : i32, message = "bqk,bkd->bqd"}> : () -> ()
    %cst_30 = arith.constant dense<0.000000e+00> : vector<2x8x4xf32>
    %31 = tpu.matmul %30, %24, %cst_30 {dimension_numbers = #tpu.dot_dimension_numbers<[2], [1], [1], [2], [0, 0, 0, 1, 1, 2], [0], [0]>} : vector<2x8x8xf32>, vector<2x8x4xf32>, vector<2x8x4xf32> -> vector<2x8x4xf32>
    "tpu.trace_stop"() : () -> ()
    %cst_31 = arith.constant dense<0.000000e+00> : vector<2x8xf32>
    %32 = vector.multi_reduction <add>, %30, %cst_31 [2] : vector<2x8x8xf32> to vector<2x8xf32>
    %33 = vector.shape_cast %32 : vector<2x8xf32> to vector<2x8x1xf32>
    %34 = tpu.reciprocal %33 {approx = true} : vector<2x8x1xf32> -> vector<2x8x1xf32>
    %35 = vector.broadcast %34 : vector<2x8x1xf32> to vector<2x8x4xf32>
    %36 = arith.mulf %31, %35 : vector<2x8x4xf32>
    %c0_32 = arith.constant 0 : index
    %c0_33 = arith.constant 0 : index
    %c4 = arith.constant 4 : index
    %37 = vector.load %arg4[%c0_32, %c0_33, %c4] : memref<2x8x32xf32, #tpu.memory_space<vmem>>, vector<2x8x4xf32>
    tpu.vector_store %arg4[%c0_32, %c0_33, %c4], %36 {strides = array<i32>} : memref<2x8x32xf32, #tpu.memory_space<vmem>>, vector<2x8x4xf32>,
    %c2 = arith.constant 2 : index
    %c0_34 = arith.constant 0 : index
    %c0_35 = arith.constant 0 : index
    %c0_36 = arith.constant 0 : index
    %38 = vector.load %arg1[%c2, %c0_34, %c0_35, %c0_36] : memref<8x2x8x4xf32, #tpu.memory_space<vmem>>, vector<1x2x8x4xf32>
    %39 = vector.shape_cast %38 : vector<1x2x8x4xf32> to vector<2x8x4xf32>
    %c2_37 = arith.constant 2 : index
    %c0_38 = arith.constant 0 : index
    %c0_39 = arith.constant 0 : index
    %c0_40 = arith.constant 0 : index
    %40 = vector.load %arg2[%c2_37, %c0_38, %c0_39, %c0_40] : memref<8x2x8x4xf32, #tpu.memory_space<vmem>>, vector<1x2x8x4xf32>
    %41 = vector.shape_cast %40 : vector<1x2x8x4xf32> to vector<2x8x4xf32>
    %c2_41 = arith.constant 2 : index
    %c0_42 = arith.constant 0 : index
    %c0_43 = arith.constant 0 : index
    %c0_44 = arith.constant 0 : index
    %42 = vector.load %arg3[%c2_41, %c0_42, %c0_43, %c0_44] : memref<8x2x8x4xf32, #tpu.memory_space<vmem>>, vector<1x2x8x4xf32>
    %43 = vector.shape_cast %42 : vector<1x2x8x4xf32> to vector<2x8x4xf32>
    "tpu.trace_start"() <{level = 10 : i32, message = "bqd,bkd->bqk"}> : () -> ()
    %cst_45 = arith.constant dense<0.000000e+00> : vector<2x8x8xf32>
    %44 = tpu.matmul %39, %41, %cst_45 {dimension_numbers = #tpu.dot_dimension_numbers<[2], [2], [1], [1], [0, 0, 0, 1, 1, 1], [0], [0]>} : vector<2x8x4xf32>, vector<2x8x4xf32>, vector<2x8x8xf32> -> vector<2x8x8xf32>
    "tpu.trace_stop"() : () -> ()
    %cst_46 = arith.constant dense<0xFF800000> : vector<2x8xf32>
    %45 = vector.multi_reduction <maximumf>, %44, %cst_46 [2] : vector<2x8x8xf32> to vector<2x8xf32>
    %46 = vector.shape_cast %45 : vector<2x8xf32> to vector<2x8x1xf32>
    %47 = vector.broadcast %46 : vector<2x8x1xf32> to vector<2x8x8xf32>
    %48 = arith.subf %44, %47 : vector<2x8x8xf32>
    %49 = math.exp %48 : vector<2x8x8xf32>
    "tpu.trace_start"() <{level = 10 : i32, message = "bqk,bkd->bqd"}> : () -> ()
    %cst_47 = arith.constant dense<0.000000e+00> : vector<2x8x4xf32>
    %50 = tpu.matmul %49, %43, %cst_47 {dimension_numbers = #tpu.dot_dimension_numbers<[2], [1], [1], [2], [0, 0, 0, 1, 1, 2], [0], [0]>} : vector<2x8x8xf32>, vector<2x8x4xf32>, vector<2x8x4xf32> -> vector<2x8x4xf32>
    "tpu.trace_stop"() : () -> ()
    %cst_48 = arith.constant dense<0.000000e+00> : vector<2x8xf32>
    %51 = vector.multi_reduction <add>, %49, %cst_48 [2] : vector<2x8x8xf32> to vector<2x8xf32>
    %52 = vector.shape_cast %51 : vector<2x8xf32> to vector<2x8x1xf32>
    %53 = tpu.reciprocal %52 {approx = true} : vector<2x8x1xf32> -> vector<2x8x1xf32>
    %54 = vector.broadcast %53 : vector<2x8x1xf32> to vector<2x8x4xf32>
    %55 = arith.mulf %50, %54 : vector<2x8x4xf32>
    %c0_49 = arith.constant 0 : index
    %c0_50 = arith.constant 0 : index
    %c8 = arith.constant 8 : index
    %56 = vector.load %arg4[%c0_49, %c0_50, %c8] : memref<2x8x32xf32, #tpu.memory_space<vmem>>, vector<2x8x4xf32>
    tpu.vector_store %arg4[%c0_49, %c0_50, %c8], %55 {strides = array<i32>} : memref<2x8x32xf32, #tpu.memory_space<vmem>>, vector<2x8x4xf32>,
    %c3 = arith.constant 3 : index
    %c0_51 = arith.constant 0 : index
    %c0_52 = arith.constant 0 : index
    %c0_53 = arith.constant 0 : index
    %57 = vector.load %arg1[%c3, %c0_51, %c0_52, %c0_53] : memref<8x2x8x4xf32, #tpu.memory_space<vmem>>, vector<1x2x8x4xf32>
    %58 = vector.shape_cast %57 : vector<1x2x8x4xf32> to vector<2x8x4xf32>
    %c3_54 = arith.constant 3 : index
    %c0_55 = arith.constant 0 : index
    %c0_56 = arith.constant 0 : index
    %c0_57 = arith.constant 0 : index
    %59 = vector.load %arg2[%c3_54, %c0_55, %c0_56, %c0_57] : memref<8x2x8x4xf32, #tpu.memory_space<vmem>>, vector<1x2x8x4xf32>
    %60 = vector.shape_cast %59 : vector<1x2x8x4xf32> to vector<2x8x4xf32>
    %c3_58 = arith.constant 3 : index
    %c0_59 = arith.constant 0 : index
    %c0_60 = arith.constant 0 : index
    %c0_61 = arith.constant 0 : index
    %61 = vector.load %arg3[%c3_58, %c0_59, %c0_60, %c0_61] : memref<8x2x8x4xf32, #tpu.memory_space<vmem>>, vector<1x2x8x4xf32>
    %62 = vector.shape_cast %61 : vector<1x2x8x4xf32> to vector<2x8x4xf32>
    "tpu.trace_start"() <{level = 10 : i32, message = "bqd,bkd->bqk"}> : () -> ()
    %cst_62 = arith.constant dense<0.000000e+00> : vector<2x8x8xf32>
    %63 = tpu.matmul %58, %60, %cst_62 {dimension_numbers = #tpu.dot_dimension_numbers<[2], [2], [1], [1], [0, 0, 0, 1, 1, 1], [0], [0]>} : vector<2x8x4xf32>, vector<2x8x4xf32>, vector<2x8x8xf32> -> vector<2x8x8xf32>
    "tpu.trace_stop"() : () -> ()
    %cst_63 = arith.constant dense<0xFF800000> : vector<2x8xf32>
    %64 = vector.multi_reduction <maximumf>, %63, %cst_63 [2] : vector<2x8x8xf32> to vector<2x8xf32>
    %65 = vector.shape_cast %64 : vector<2x8xf32> to vector<2x8x1xf32>
    %66 = vector.broadcast %65 : vector<2x8x1xf32> to vector<2x8x8xf32>
    %67 = arith.subf %63, %66 : vector<2x8x8xf32>
    %68 = math.exp %67 : vector<2x8x8xf32>
    "tpu.trace_start"() <{level = 10 : i32, message = "bqk,bkd->bqd"}> : () -> ()
    %cst_64 = arith.constant dense<0.000000e+00> : vector<2x8x4xf32>
    %69 = tpu.matmul %68, %62, %cst_64 {dimension_numbers = #tpu.dot_dimension_numbers<[2], [1], [1], [2], [0, 0, 0, 1, 1, 2], [0], [0]>} : vector<2x8x8xf32>, vector<2x8x4xf32>, vector<2x8x4xf32> -> vector<2x8x4xf32>
    "tpu.trace_stop"() : () -> ()
    %cst_65 = arith.constant dense<0.000000e+00> : vector<2x8xf32>
    %70 = vector.multi_reduction <add>, %68, %cst_65 [2] : vector<2x8x8xf32> to vector<2x8xf32>
    %71 = vector.shape_cast %70 : vector<2x8xf32> to vector<2x8x1xf32>
    %72 = tpu.reciprocal %71 {approx = true} : vector<2x8x1xf32> -> vector<2x8x1xf32>
    %73 = vector.broadcast %72 : vector<2x8x1xf32> to vector<2x8x4xf32>
    %74 = arith.mulf %69, %73 : vector<2x8x4xf32>
    %c0_66 = arith.constant 0 : index
    %c0_67 = arith.constant 0 : index
    %c12 = arith.constant 12 : index
    %75 = vector.load %arg4[%c0_66, %c0_67, %c12] : memref<2x8x32xf32, #tpu.memory_space<vmem>>, vector<2x8x4xf32>
    tpu.vector_store %arg4[%c0_66, %c0_67, %c12], %74 {strides = array<i32>} : memref<2x8x32xf32, #tpu.memory_space<vmem>>, vector<2x8x4xf32>,
    %c4_68 = arith.constant 4 : index
    %c0_69 = arith.constant 0 : index
    %c0_70 = arith.constant 0 : index
    %c0_71 = arith.constant 0 : index
    %76 = vector.load %arg1[%c4_68, %c0_69, %c0_70, %c0_71] : memref<8x2x8x4xf32, #tpu.memory_space<vmem>>, vector<1x2x8x4xf32>
    %77 = vector.shape_cast %76 : vector<1x2x8x4xf32> to vector<2x8x4xf32>
    %c4_72 = arith.constant 4 : index
    %c0_73 = arith.constant 0 : index
    %c0_74 = arith.constant 0 : index
    %c0_75 = arith.constant 0 : index
    %78 = vector.load %arg2[%c4_72, %c0_73, %c0_74, %c0_75] : memref<8x2x8x4xf32, #tpu.memory_space<vmem>>, vector<1x2x8x4xf32>
    %79 = vector.shape_cast %78 : vector<1x2x8x4xf32> to vector<2x8x4xf32>
    %c4_76 = arith.constant 4 : index
    %c0_77 = arith.constant 0 : index
    %c0_78 = arith.constant 0 : index
    %c0_79 = arith.constant 0 : index
    %80 = vector.load %arg3[%c4_76, %c0_77, %c0_78, %c0_79] : memref<8x2x8x4xf32, #tpu.memory_space<vmem>>, vector<1x2x8x4xf32>
    %81 = vector.shape_cast %80 : vector<1x2x8x4xf32> to vector<2x8x4xf32>
    "tpu.trace_start"() <{level = 10 : i32, message = "bqd,bkd->bqk"}> : () -> ()
    %cst_80 = arith.constant dense<0.000000e+00> : vector<2x8x8xf32>
    %82 = tpu.matmul %77, %79, %cst_80 {dimension_numbers = #tpu.dot_dimension_numbers<[2], [2], [1], [1], [0, 0, 0, 1, 1, 1], [0], [0]>} : vector<2x8x4xf32>, vector<2x8x4xf32>, vector<2x8x8xf32> -> vector<2x8x8xf32>
    "tpu.trace_stop"() : () -> ()
    %cst_81 = arith.constant dense<0xFF800000> : vector<2x8xf32>
    %83 = vector.multi_reduction <maximumf>, %82, %cst_81 [2] : vector<2x8x8xf32> to vector<2x8xf32>
    %84 = vector.shape_cast %83 : vector<2x8xf32> to vector<2x8x1xf32>
    %85 = vector.broadcast %84 : vector<2x8x1xf32> to vector<2x8x8xf32>
    %86 = arith.subf %82, %85 : vector<2x8x8xf32>
    %87 = math.exp %86 : vector<2x8x8xf32>
    "tpu.trace_start"() <{level = 10 : i32, message = "bqk,bkd->bqd"}> : () -> ()
    %cst_82 = arith.constant dense<0.000000e+00> : vector<2x8x4xf32>
    %88 = tpu.matmul %87, %81, %cst_82 {dimension_numbers = #tpu.dot_dimension_numbers<[2], [1], [1], [2], [0, 0, 0, 1, 1, 2], [0], [0]>} : vector<2x8x8xf32>, vector<2x8x4xf32>, vector<2x8x4xf32> -> vector<2x8x4xf32>
    "tpu.trace_stop"() : () -> ()
    %cst_83 = arith.constant dense<0.000000e+00> : vector<2x8xf32>
    %89 = vector.multi_reduction <add>, %87, %cst_83 [2] : vector<2x8x8xf32> to vector<2x8xf32>
    %90 = vector.shape_cast %89 : vector<2x8xf32> to vector<2x8x1xf32>
    %91 = tpu.reciprocal %90 {approx = true} : vector<2x8x1xf32> -> vector<2x8x1xf32>
    %92 = vector.broadcast %91 : vector<2x8x1xf32> to vector<2x8x4xf32>
    %93 = arith.mulf %88, %92 : vector<2x8x4xf32>
    %c0_84 = arith.constant 0 : index
    %c0_85 = arith.constant 0 : index
    %c16 = arith.constant 16 : index
    %94 = vector.load %arg4[%c0_84, %c0_85, %c16] : memref<2x8x32xf32, #tpu.memory_space<vmem>>, vector<2x8x4xf32>
    tpu.vector_store %arg4[%c0_84, %c0_85, %c16], %93 {strides = array<i32>} : memref<2x8x32xf32, #tpu.memory_space<vmem>>, vector<2x8x4xf32>,
    %c5 = arith.constant 5 : index
    %c0_86 = arith.constant 0 : index
    %c0_87 = arith.constant 0 : index
    %c0_88 = arith.constant 0 : index
    %95 = vector.load %arg1[%c5, %c0_86, %c0_87, %c0_88] : memref<8x2x8x4xf32, #tpu.memory_space<vmem>>, vector<1x2x8x4xf32>
    %96 = vector.shape_cast %95 : vector<1x2x8x4xf32> to vector<2x8x4xf32>
    %c5_89 = arith.constant 5 : index
    %c0_90 = arith.constant 0 : index
    %c0_91 = arith.constant 0 : index
    %c0_92 = arith.constant 0 : index
    %97 = vector.load %arg2[%c5_89, %c0_90, %c0_91, %c0_92] : memref<8x2x8x4xf32, #tpu.memory_space<vmem>>, vector<1x2x8x4xf32>
    %98 = vector.shape_cast %97 : vector<1x2x8x4xf32> to vector<2x8x4xf32>
    %c5_93 = arith.constant 5 : index
    %c0_94 = arith.constant 0 : index
    %c0_95 = arith.constant 0 : index
    %c0_96 = arith.constant 0 : index
    %99 = vector.load %arg3[%c5_93, %c0_94, %c0_95, %c0_96] : memref<8x2x8x4xf32, #tpu.memory_space<vmem>>, vector<1x2x8x4xf32>
    %100 = vector.shape_cast %99 : vector<1x2x8x4xf32> to vector<2x8x4xf32>
    "tpu.trace_start"() <{level = 10 : i32, message = "bqd,bkd->bqk"}> : () -> ()
    %cst_97 = arith.constant dense<0.000000e+00> : vector<2x8x8xf32>
    %101 = tpu.matmul %96, %98, %cst_97 {dimension_numbers = #tpu.dot_dimension_numbers<[2], [2], [1], [1], [0, 0, 0, 1, 1, 1], [0], [0]>} : vector<2x8x4xf32>, vector<2x8x4xf32>, vector<2x8x8xf32> -> vector<2x8x8xf32>
    "tpu.trace_stop"() : () -> ()
    %cst_98 = arith.constant dense<0xFF800000> : vector<2x8xf32>
    %102 = vector.multi_reduction <maximumf>, %101, %cst_98 [2] : vector<2x8x8xf32> to vector<2x8xf32>
    %103 = vector.shape_cast %102 : vector<2x8xf32> to vector<2x8x1xf32>
    %104 = vector.broadcast %103 : vector<2x8x1xf32> to vector<2x8x8xf32>
    %105 = arith.subf %101, %104 : vector<2x8x8xf32>
    %106 = math.exp %105 : vector<2x8x8xf32>
    "tpu.trace_start"() <{level = 10 : i32, message = "bqk,bkd->bqd"}> : () -> ()
    %cst_99 = arith.constant dense<0.000000e+00> : vector<2x8x4xf32>
    %107 = tpu.matmul %106, %100, %cst_99 {dimension_numbers = #tpu.dot_dimension_numbers<[2], [1], [1], [2], [0, 0, 0, 1, 1, 2], [0], [0]>} : vector<2x8x8xf32>, vector<2x8x4xf32>, vector<2x8x4xf32> -> vector<2x8x4xf32>
    "tpu.trace_stop"() : () -> ()
    %cst_100 = arith.constant dense<0.000000e+00> : vector<2x8xf32>
    %108 = vector.multi_reduction <add>, %106, %cst_100 [2] : vector<2x8x8xf32> to vector<2x8xf32>
    %109 = vector.shape_cast %108 : vector<2x8xf32> to vector<2x8x1xf32>
    %110 = tpu.reciprocal %109 {approx = true} : vector<2x8x1xf32> -> vector<2x8x1xf32>
    %111 = vector.broadcast %110 : vector<2x8x1xf32> to vector<2x8x4xf32>
    %112 = arith.mulf %107, %111 : vector<2x8x4xf32>
    %c0_101 = arith.constant 0 : index
    %c0_102 = arith.constant 0 : index
    %c20 = arith.constant 20 : index
    %113 = vector.load %arg4[%c0_101, %c0_102, %c20] : memref<2x8x32xf32, #tpu.memory_space<vmem>>, vector<2x8x4xf32>
    tpu.vector_store %arg4[%c0_101, %c0_102, %c20], %112 {strides = array<i32>} : memref<2x8x32xf32, #tpu.memory_space<vmem>>, vector<2x8x4xf32>,
    %c6 = arith.constant 6 : index
    %c0_103 = arith.constant 0 : index
    %c0_104 = arith.constant 0 : index
    %c0_105 = arith.constant 0 : index
    %114 = vector.load %arg1[%c6, %c0_103, %c0_104, %c0_105] : memref<8x2x8x4xf32, #tpu.memory_space<vmem>>, vector<1x2x8x4xf32>
    %115 = vector.shape_cast %114 : vector<1x2x8x4xf32> to vector<2x8x4xf32>
    %c6_106 = arith.constant 6 : index
    %c0_107 = arith.constant 0 : index
    %c0_108 = arith.constant 0 : index
    %c0_109 = arith.constant 0 : index
    %116 = vector.load %arg2[%c6_106, %c0_107, %c0_108, %c0_109] : memref<8x2x8x4xf32, #tpu.memory_space<vmem>>, vector<1x2x8x4xf32>
    %117 = vector.shape_cast %116 : vector<1x2x8x4xf32> to vector<2x8x4xf32>
    %c6_110 = arith.constant 6 : index
    %c0_111 = arith.constant 0 : index
    %c0_112 = arith.constant 0 : index
    %c0_113 = arith.constant 0 : index
    %118 = vector.load %arg3[%c6_110, %c0_111, %c0_112, %c0_113] : memref<8x2x8x4xf32, #tpu.memory_space<vmem>>, vector<1x2x8x4xf32>
    %119 = vector.shape_cast %118 : vector<1x2x8x4xf32> to vector<2x8x4xf32>
    "tpu.trace_start"() <{level = 10 : i32, message = "bqd,bkd->bqk"}> : () -> ()
    %cst_114 = arith.constant dense<0.000000e+00> : vector<2x8x8xf32>
    %120 = tpu.matmul %115, %117, %cst_114 {dimension_numbers = #tpu.dot_dimension_numbers<[2], [2], [1], [1], [0, 0, 0, 1, 1, 1], [0], [0]>} : vector<2x8x4xf32>, vector<2x8x4xf32>, vector<2x8x8xf32> -> vector<2x8x8xf32>
    "tpu.trace_stop"() : () -> ()
    %cst_115 = arith.constant dense<0xFF800000> : vector<2x8xf32>
    %121 = vector.multi_reduction <maximumf>, %120, %cst_115 [2] : vector<2x8x8xf32> to vector<2x8xf32>
    %122 = vector.shape_cast %121 : vector<2x8xf32> to vector<2x8x1xf32>
    %123 = vector.broadcast %122 : vector<2x8x1xf32> to vector<2x8x8xf32>
    %124 = arith.subf %120, %123 : vector<2x8x8xf32>
    %125 = math.exp %124 : vector<2x8x8xf32>
    "tpu.trace_start"() <{level = 10 : i32, message = "bqk,bkd->bqd"}> : () -> ()
    %cst_116 = arith.constant dense<0.000000e+00> : vector<2x8x4xf32>
    %126 = tpu.matmul %125, %119, %cst_116 {dimension_numbers = #tpu.dot_dimension_numbers<[2], [1], [1], [2], [0, 0, 0, 1, 1, 2], [0], [0]>} : vector<2x8x8xf32>, vector<2x8x4xf32>, vector<2x8x4xf32> -> vector<2x8x4xf32>
    "tpu.trace_stop"() : () -> ()
    %cst_117 = arith.constant dense<0.000000e+00> : vector<2x8xf32>
    %127 = vector.multi_reduction <add>, %125, %cst_117 [2] : vector<2x8x8xf32> to vector<2x8xf32>
    %128 = vector.shape_cast %127 : vector<2x8xf32> to vector<2x8x1xf32>
    %129 = tpu.reciprocal %128 {approx = true} : vector<2x8x1xf32> -> vector<2x8x1xf32>
    %130 = vector.broadcast %129 : vector<2x8x1xf32> to vector<2x8x4xf32>
    %131 = arith.mulf %126, %130 : vector<2x8x4xf32>
    %c0_118 = arith.constant 0 : index
    %c0_119 = arith.constant 0 : index
    %c24 = arith.constant 24 : index
    %132 = vector.load %arg4[%c0_118, %c0_119, %c24] : memref<2x8x32xf32, #tpu.memory_space<vmem>>, vector<2x8x4xf32>
    tpu.vector_store %arg4[%c0_118, %c0_119, %c24], %131 {strides = array<i32>} : memref<2x8x32xf32, #tpu.memory_space<vmem>>, vector<2x8x4xf32>,
    %c7 = arith.constant 7 : index
    %c0_120 = arith.constant 0 : index
    %c0_121 = arith.constant 0 : index
    %c0_122 = arith.constant 0 : index
    %133 = vector.load %arg1[%c7, %c0_120, %c0_121, %c0_122] : memref<8x2x8x4xf32, #tpu.memory_space<vmem>>, vector<1x2x8x4xf32>
    %134 = vector.shape_cast %133 : vector<1x2x8x4xf32> to vector<2x8x4xf32>
    %c7_123 = arith.constant 7 : index
    %c0_124 = arith.constant 0 : index
    %c0_125 = arith.constant 0 : index
    %c0_126 = arith.constant 0 : index
    %135 = vector.load %arg2[%c7_123, %c0_124, %c0_125, %c0_126] : memref<8x2x8x4xf32, #tpu.memory_space<vmem>>, vector<1x2x8x4xf32>
    %136 = vector.shape_cast %135 : vector<1x2x8x4xf32> to vector<2x8x4xf32>
    %c7_127 = arith.constant 7 : index
    %c0_128 = arith.constant 0 : index
    %c0_129 = arith.constant 0 : index
    %c0_130 = arith.constant 0 : index
    %137 = vector.load %arg3[%c7_127, %c0_128, %c0_129, %c0_130] : memref<8x2x8x4xf32, #tpu.memory_space<vmem>>, vector<1x2x8x4xf32>
    %138 = vector.shape_cast %137 : vector<1x2x8x4xf32> to vector<2x8x4xf32>
    "tpu.trace_start"() <{level = 10 : i32, message = "bqd,bkd->bqk"}> : () -> ()
    %cst_131 = arith.constant dense<0.000000e+00> : vector<2x8x8xf32>
    %139 = tpu.matmul %134, %136, %cst_131 {dimension_numbers = #tpu.dot_dimension_numbers<[2], [2], [1], [1], [0, 0, 0, 1, 1, 1], [0], [0]>} : vector<2x8x4xf32>, vector<2x8x4xf32>, vector<2x8x8xf32> -> vector<2x8x8xf32>
    "tpu.trace_stop"() : () -> ()
    %cst_132 = arith.constant dense<0xFF800000> : vector<2x8xf32>
    %140 = vector.multi_reduction <maximumf>, %139, %cst_132 [2] : vector<2x8x8xf32> to vector<2x8xf32>
    %141 = vector.shape_cast %140 : vector<2x8xf32> to vector<2x8x1xf32>
    %142 = vector.broadcast %141 : vector<2x8x1xf32> to vector<2x8x8xf32>
    %143 = arith.subf %139, %142 : vector<2x8x8xf32>
    %144 = math.exp %143 : vector<2x8x8xf32>
    "tpu.trace_start"() <{level = 10 : i32, message = "bqk,bkd->bqd"}> : () -> ()
    %cst_133 = arith.constant dense<0.000000e+00> : vector<2x8x4xf32>
    %145 = tpu.matmul %144, %138, %cst_133 {dimension_numbers = #tpu.dot_dimension_numbers<[2], [1], [1], [2], [0, 0, 0, 1, 1, 2], [0], [0]>} : vector<2x8x8xf32>, vector<2x8x4xf32>, vector<2x8x4xf32> -> vector<2x8x4xf32>
    "tpu.trace_stop"() : () -> ()
    %cst_134 = arith.constant dense<0.000000e+00> : vector<2x8xf32>
    %146 = vector.multi_reduction <add>, %144, %cst_134 [2] : vector<2x8x8xf32> to vector<2x8xf32>
    %147 = vector.shape_cast %146 : vector<2x8xf32> to vector<2x8x1xf32>
    %148 = tpu.reciprocal %147 {approx = true} : vector<2x8x1xf32> -> vector<2x8x1xf32>
    %149 = vector.broadcast %148 : vector<2x8x1xf32> to vector<2x8x4xf32>
    %150 = arith.mulf %145, %149 : vector<2x8x4xf32>
    %c0_135 = arith.constant 0 : index
    %c0_136 = arith.constant 0 : index
    %c28 = arith.constant 28 : index
    %151 = vector.load %arg4[%c0_135, %c0_136, %c28] : memref<2x8x32xf32, #tpu.memory_space<vmem>>, vector<2x8x4xf32>
    tpu.vector_store %arg4[%c0_135, %c0_136, %c28], %150 {strides = array<i32>} : memref<2x8x32xf32, #tpu.memory_space<vmem>>, vector<2x8x4xf32>,
    return
  }
  func.func @transform_0(%arg0: i32) -> (i32, i32, i32, i32) {
    %c0_i32 = arith.constant 0 : i32
    %c0_i32_0 = arith.constant 0 : i32
    %c0_i32_1 = arith.constant 0 : i32
    %c0_i32_2 = arith.constant 0 : i32
    return %c0_i32, %c0_i32_0, %arg0, %c0_i32_1 : i32, i32, i32, i32
  }
  func.func @transform_1(%arg0: i32) -> (i32, i32, i32, i32) {
    %c0_i32 = arith.constant 0 : i32
    %c0_i32_0 = arith.constant 0 : i32
    %c0_i32_1 = arith.constant 0 : i32
    %c0_i32_2 = arith.constant 0 : i32
    %c0_i32_3 = arith.constant 0 : i32
    return %c0_i32, %c0_i32_0, %c0_i32_1, %c0_i32_2 : i32, i32, i32, i32
  }
  func.func @transform_2(%arg0: i32) -> (i32, i32, i32, i32) {
    %c0_i32 = arith.constant 0 : i32
    %c0_i32_0 = arith.constant 0 : i32
    %c0_i32_1 = arith.constant 0 : i32
    %c0_i32_2 = arith.constant 0 : i32
    %c0_i32_3 = arith.constant 0 : i32
    return %c0_i32, %c0_i32_0, %c0_i32_1, %c0_i32_2 : i32, i32, i32, i32
  }
  func.func @transform_3(%arg0: i32) -> (i32, i32, i32) {
    %c0_i32 = arith.constant 0 : i32
    %c0_i32_0 = arith.constant 0 : i32
    %c0_i32_1 = arith.constant 0 : i32
    return %c0_i32, %arg0, %c0_i32_0 : i32, i32, i32
  }
}

</mosaic_0001>

<bundles_post_ra>
// kernel: tpu_custom_call.1
= control target key start
LH: loop header
LB: loop body
LE: loop exit
PB: predicated region body
PF: predicated region fallthrough
CT: control target
= control target key end

     0   :  { %vm21_vm0 = vcmask 31744   ;;  %v3152_v2 = vmov 0.0   ;;  %s3615_s0 = inlined_call_operand.vmem [shape: f32[8,2,8,4], index: 0, kind: input, shape index: {}]   ;;  %s3616_s1 = inlined_call_operand.vmem [shape: f32[8,2,8,4], index: 1, kind: input, shape index: {}]   ;;  %s3617_s2 = inlined_call_operand.vmem [shape: f32[8,2,8,4], index: 2, kind: input, shape index: {}]   ;;  %s3618_s3 = inlined_call_operand.hbm [shape: f32[2,8,32], index: 3, kind: output, shape index: {}]  }
   0x1   :  { %v17_v0 = vld [vmem:[%s3616_s1] sm:$0xff]  ;;  %v18_v1 = vld [vmem:[%s3616_s1 + $0x8] sm:$0xff]  ;;  %2895 = vmatprep.subr.mxu0 %v3152_v2  ;;  %2900 = vmatprep.subr.mxu1 %v3152_v2 }
   0x2   :  { %8 = vsyncpa [#allocation3], 0  ;;  %2896 = vmatpush3.xpose.msk.msra.mxu0 %vm21_vm0, %v17_v0  ;;  %vm3153_vm1 = vmmov 0   ;;  %v15_v3 = vld [vmem:[%s3615_s0] sm:$0xff]  ;;  %2901 = vmatpush3.xpose.msk.msra.mxu1 %vm21_vm0, %v18_v1  ;;  %v16_v4 = vld [vmem:[%s3615_s0 + $0x8] sm:$0xff]  ;;  %vm174_vm2 = vcmask 64512  }
   0x3   :  { %2897 = vmatprep.mubr.msk.f32.mxu0 %vm3153_vm1, %v3152_v2  ;;  %2902 = vmatprep.mubr.msk.f32.mxu1 %vm3153_vm1, %v3152_v2  ;;  %v19_v11 = vld [vmem:[%s3617_s2] sm:$0xff]  ;;  %v20_v12 = vld [vmem:[%s3617_s2 + $0x8] sm:$0xff]  ;;  %v2749_v19 = vld [vmem:[%s3616_s1 + $0x10] sm:$0xff]  ;;  %vm682_vm3 = vcmask 64544   ;;  %s3155_s25 = smov 8   ;;  %vm1022_vm4 = vcmask 97344  }
   0x4   :  { %2905 = vmatprep.subr.mxu0 %v3152_v2  ;;  %2910 = vmatprep.subr.mxu1 %v3152_v2  ;;  %v2747_v21 = vld [vmem:[%s3615_s0 + $0x10] sm:$0xff]  ;;  %v2750_v22 = vld [vmem:[%s3616_s1 + $0x18] sm:$0xff]  ;;  %v2761_v43 = vld [vmem:[%s3616_s1 + $0x20] sm:$0xff]  ;;  %s3156_s26 = smov 12   ;;  %s3157_s27 = smov 16   ;;  %vm1362_vm5 = vcmask 130144  }
   0x5   :  { %2898 = vmatmul.mubr.msk.f32.vlgmr.msra.gmra.mxu0 %vm21_vm0, %v15_v3  ;;  %2903 = vmatmul.mubr.msk.f32.vlgmr.msra.gmra.mxu1 %vm21_vm0, %v16_v4  ;;  %v2748_v24 = vld [vmem:[%s3615_s0 + $0x18] sm:$0xff]  ;;  %v2751_v35 = vld [vmem:[%s3617_s2 + $0x10] sm:$0xff]  ;;  %v2759_v45 = vld [vmem:[%s3615_s0 + $0x20] sm:$0xff]  ;;  %s3158_s28 = smov 20   ;;  %s3159_s29 = smov 24   ;;  %vm1702_vm6 = vcmask 162944  }
   0x6   :  { %2907 = vmatprep.mubr.msk.f32.mxu0 %vm3153_vm1, %v3152_v2  ;;  %2912 = vmatprep.mubr.msk.f32.mxu1 %vm3153_vm1, %v3152_v2  ;;  %v2752_v36 = vld [vmem:[%s3617_s2 + $0x18] sm:$0xff]  ;;  %v2762_v46 = vld [vmem:[%s3616_s1 + $0x28] sm:$0xff]  ;;  %v2763_v59 = vld [vmem:[%s3617_s2 + $0x20] sm:$0xff]  ;;  %s3160_s30 = smov 28   ;;  %vm2042_vm7 = vcmask 195744   ;;  %vm2382_vm8 = vcmask 228544  }
   0x7   :  { %2906 = vmatpush3.msra.mxu0 %v19_v11  ;;  %2911 = vmatpush3.msra.mxu1 %v20_v12  ;;  %v2760_v48 = vld [vmem:[%s3615_s0 + $0x28] sm:$0xff]  ;;  %v2773_v4 = vld [vmem:[%s3616_s1 + $0x30] sm:$0xff]  ;;  %vm2722_vm9 = vcmask 261344   ;;  %s3161_s4 = smov [#allocation2]  }
   0x8   :  { %2915 = vmatprep.subr.mxu0 %v3152_v2  ;;  %2920 = vmatprep.subr.mxu1 %v3152_v2  ;;  %v2764_v60 = vld [vmem:[%s3617_s2 + $0x28] sm:$0xff]  ;;  %s2730_s5 = sshll.u32 %s3161_s4, 4  ;;  %s2731_s5 = int_to_ptr.vmem [resolvable:$true] %s2730_s5 }
   0x9   :  { %s3130_s6 = scalar_lea.vmem %s2731_s5, 256  ;;  %p3135_p1 = scmp.lt.s32.totalorder %s2731_s5, %s2731_s5 }
   0xa   :  { %p3131_p0 = scmp.ne.s32.totalorder %s2731_s5, %s3130_s6  ;;  %p3136_p2 = scmp.lt.s32.totalorder %s3130_s6, %s3130_s6 }
   0xc   :  { %p3137_p3 = por %p3136_p2, %p3135_p1 }
   0xe   :  { %p3138_p4 = pnand %p3137_p3, %p3131_p0 }
  0xc5   :  { %v94_v5 = vpop.f32.mrf.mxu0  ;;  %v170_v6 = vpop.f32.mrf.mxu1 }
  0xc6   :  { %v175_v7 = vsel %vm174_vm2, %v94_v5, -inf  ;;  %v178_v10 = vsel %vm174_vm2, %v170_v6, -inf }
  0xc7   :  { %176 = vmax.xlane.f32.xlu0 %v175_v7  ;;  %v2899_v8 = vpop.f32.mrf.mxu0  ;;  %v2904_v9 = vpop.f32.mrf.mxu1  ;;  %v2774_v7 = vld [vmem:[%s3616_s1 + $0x38] sm:$0xff] }
  0xc8   :  { %v2772_v9 = vld [vmem:[%s3615_s0 + $0x38] sm:$0xff] }
  0xcb   :  { %179 = vmax.xlane.f32.xlu0 %v178_v10 }
 0x150   :  { %v177_v13 = vpop.xlane.xlu0 %176 }
 0x151   :  { %v181_v14 = vsub.f32 %v94_v5, %v177_v13 }
 0x153   :  { %v183_v15 = vmul.f32 1.442695, %v181_v14 }
 0x154   :  { %v180_v16 = vpop.xlane.xlu0 %179 }
 0x155   :  { %3066 = vpow2.f32 %v183_v15  ;;  %v182_v17 = vsub.f32 %v170_v6, %v180_v16  ;;  %v2771_v6 = vld [vmem:[%s3615_s0 + $0x30] sm:$0xff] }
 0x157   :  { %v185_v18 = vmul.f32 1.442695, %v182_v17 }
 0x159   :  { %3068 = vpow2.f32 %v185_v18 }
 0x162   :  { %v3224_v20 = vpop.eup %3066 }
 0x163   :  { %2908 = vmatmul.mubr.msk.f32.vlgmr.msra.gmra.mxu0 %vm174_vm2, %v3224_v20 }
 0x164   :  { %2916 = vmatpush3.xpose.msk.msra.mxu0 %vm21_vm0, %v2749_v19  ;;  %2917 = vmatprep.mubr.msk.f32.mxu0 %vm3153_vm1, %v3152_v2 }
 0x165   :  { %2925 = vmatprep.subr.mxu0 %v3152_v2 }
 0x166   :  { %v3238_v23 = vpop.eup %3068 }
 0x167   :  { %2913 = vmatmul.mubr.msk.f32.vlgmr.msra.gmra.mxu1 %vm174_vm2, %v3238_v23  ;;  %2918 = vmatmul.mubr.msk.f32.vlgmr.msra.gmra.mxu0 %vm21_vm0, %v2747_v21  ;;  %v2775_v21 = vld [vmem:[%s3617_s2 + $0x30] sm:$0xff] }
 0x168   :  { %2921 = vmatpush3.xpose.msk.msra.mxu1 %vm21_vm0, %v2750_v22  ;;  %2922 = vmatprep.mubr.msk.f32.mxu1 %vm3153_vm1, %v3152_v2  ;;  %v2776_v22 = vld [vmem:[%s3617_s2 + $0x38] sm:$0xff] }
 0x169   :  { %2927 = vmatprep.mubr.msk.f32.mxu0 %vm3153_vm1, %v3152_v2  ;;  %2930 = vmatprep.subr.mxu1 %v3152_v2 }
 0x16a   :  { %2926 = vmatpush3.msra.mxu0 %v2751_v35  ;;  %v2786_v35 = vld [vmem:[%s3616_s1 + $0x48] sm:$0xff] }
 0x16b   :  { %2923 = vmatmul.mubr.msk.f32.vlgmr.msra.gmra.mxu1 %vm21_vm0, %v2748_v24  ;;  %2935 = vmatprep.subr.mxu0 %v3152_v2 }
 0x16c   :  { %2932 = vmatprep.mubr.msk.f32.mxu1 %vm3153_vm1, %v3152_v2  ;;  %2931 = vmatpush3.msra.mxu1 %v2752_v36 }
 0x16d   :  { %2940 = vmatprep.subr.mxu1 %v3152_v2 }
 0x223   :  { %v3255_v25 = vpop.f32.mrf.mxu0 }
 0x225   :  { %v2909_v26 = vpop.f32.mrf.mxu0 }
 0x227   :  { %v3257_v27 = vpop.f32.mrf.mxu1  ;;  %v426_v28 = vpop.f32.mrf.mxu0 }
 0x228   :  { %v506_v29 = vsel %vm174_vm2, %v426_v28, -inf }
 0x229   :  { %v2914_v30 = vpop.f32.mrf.mxu1  ;;  %507 = vmax.xlane.f32.xlu1 %v506_v29  ;;  %v2919_v31 = vpop.f32.mrf.mxu0 }
 0x22b   :  { %v502_v32 = vpop.f32.mrf.mxu1 }
 0x22c   :  { %v509_v33 = vsel %vm174_vm2, %v502_v32, -inf }
 0x22d   :  { %v2924_v34 = vpop.f32.mrf.mxu1  ;;  %510 = vmax.xlane.f32.xlu1 %v509_v33 }
 0x22e   :  { %v2783_v34 = vld [vmem:[%s3615_s0 + $0x40] sm:$0xff] }
 0x2b2   :  { %v508_v37 = vpop.xlane.xlu1 %507 }
 0x2b3   :  { %v512_v38 = vsub.f32 %v426_v28, %v508_v37  ;;  %v2784_v37 = vld [vmem:[%s3615_s0 + $0x48] sm:$0xff] }
 0x2b5   :  { %v514_v39 = vmul.f32 1.442695, %v512_v38 }
 0x2b6   :  { %v511_v40 = vpop.xlane.xlu1 %510 }
 0x2b7   :  { %3070 = vpow2.f32 %v514_v39  ;;  %v513_v41 = vsub.f32 %v502_v32, %v511_v40  ;;  %v2785_v32 = vld [vmem:[%s3616_s1 + $0x40] sm:$0xff] }
 0x2b9   :  { %v516_v42 = vmul.f32 1.442695, %v513_v41 }
 0x2bb   :  { %3072 = vpow2.f32 %v516_v42 }
 0x2c4   :  { %v3272_v44 = vpop.eup %3070 }
 0x2c5   :  { %2928 = vmatmul.mubr.msk.f32.vlgmr.msra.gmra.mxu0 %vm174_vm2, %v3272_v44 }
 0x2c6   :  { %2936 = vmatpush3.xpose.msk.msra.mxu0 %vm21_vm0, %v2761_v43  ;;  %2937 = vmatprep.mubr.msk.f32.mxu0 %vm3153_vm1, %v3152_v2 }
 0x2c7   :  { %2945 = vmatprep.subr.mxu0 %v3152_v2 }
 0x2c8   :  { %v3286_v47 = vpop.eup %3072 }
 0x2c9   :  { %2933 = vmatmul.mubr.msk.f32.vlgmr.msra.gmra.mxu1 %vm174_vm2, %v3286_v47  ;;  %2938 = vmatmul.mubr.msk.f32.vlgmr.msra.gmra.mxu0 %vm21_vm0, %v2759_v45 }
 0x2ca   :  { %2941 = vmatpush3.xpose.msk.msra.mxu1 %vm21_vm0, %v2762_v46  ;;  %2942 = vmatprep.mubr.msk.f32.mxu1 %vm3153_vm1, %v3152_v2 }
 0x2cb   :  { %2947 = vmatprep.mubr.msk.f32.mxu0 %vm3153_vm1, %v3152_v2  ;;  %2950 = vmatprep.subr.mxu1 %v3152_v2 }
 0x2cc   :  { %2946 = vmatpush3.msra.mxu0 %v2763_v59 }
 0x2cd   :  { %2943 = vmatmul.mubr.msk.f32.vlgmr.msra.gmra.mxu1 %vm21_vm0, %v2760_v48  ;;  %2955 = vmatprep.subr.mxu0 %v3152_v2 }
 0x2ce   :  { %2952 = vmatprep.mubr.msk.f32.mxu1 %vm3153_vm1, %v3152_v2  ;;  %2951 = vmatpush3.msra.mxu1 %v2764_v60  ;;  %v2797_v60 = vld [vmem:[%s3616_s1 + $0x50] sm:$0xff] }
 0x2cf   :  { %2960 = vmatprep.subr.mxu1 %v3152_v2 }
 0x385   :  { %v3303_v49 = vpop.f32.mrf.mxu0 }
 0x387   :  { %v2929_v50 = vpop.f32.mrf.mxu0 }
 0x389   :  { %v3305_v51 = vpop.f32.mrf.mxu1  ;;  %v766_v52 = vpop.f32.mrf.mxu0 }
 0x38a   :  { %v846_v53 = vsel %vm174_vm2, %v766_v52, -inf }
 0x38b   :  { %v2934_v54 = vpop.f32.mrf.mxu1  ;;  %847 = vmax.xlane.f32.xlu0 %v846_v53  ;;  %v2939_v55 = vpop.f32.mrf.mxu0  ;;  %v2788_v53 = vld [vmem:[%s3617_s2 + $0x48] sm:$0xff] }
 0x38d   :  { %v842_v56 = vpop.f32.mrf.mxu1 }
 0x38e   :  { %v849_v57 = vsel %vm174_vm2, %v842_v56, -inf }
 0x38f   :  { %850 = vmax.xlane.f32.xlu1 %v849_v57  ;;  %v2944_v58 = vpop.f32.mrf.mxu1 }
 0x414   :  { %v848_v61 = vpop.xlane.xlu0 %847 }
 0x415   :  { %v852_v62 = vsub.f32 %v766_v52, %v848_v61  ;;  %v2787_v52 = vld [vmem:[%s3617_s2 + $0x40] sm:$0xff] }
 0x417   :  { %v854_v63 = vmul.f32 1.442695, %v852_v62  ;;  %v2795_v62 = vld [vmem:[%s3615_s0 + $0x50] sm:$0xff] }
 0x418   :  { %v851_v0 = vpop.xlane.xlu1 %850 }
 0x419   :  { %3074 = vpow2.f32 %v854_v63  ;;  %v853_v1 = vsub.f32 %v842_v56, %v851_v0  ;;  %v2798_v63 = vld [vmem:[%s3616_s1 + $0x58] sm:$0xff] }
 0x41b   :  { %v856_v3 = vmul.f32 1.442695, %v853_v1  ;;  %v2796_v1 = vld [vmem:[%s3615_s0 + $0x58] sm:$0xff] }
 0x41d   :  { %3076 = vpow2.f32 %v856_v3 }
 0x426   :  { %v3320_v5 = vpop.eup %3074 }
 0x427   :  { %2948 = vmatmul.mubr.msk.f32.vlgmr.msra.gmra.mxu0 %vm174_vm2, %v3320_v5 }
 0x428   :  { %2956 = vmatpush3.xpose.msk.msra.mxu0 %vm21_vm0, %v2773_v4  ;;  %2957 = vmatprep.mubr.msk.f32.mxu0 %vm3153_vm1, %v3152_v2 }
 0x429   :  { %2965 = vmatprep.subr.mxu0 %v3152_v2 }
 0x42a   :  { %v3334_v8 = vpop.eup %3076 }
 0x42b   :  { %2953 = vmatmul.mubr.msk.f32.vlgmr.msra.gmra.mxu1 %vm174_vm2, %v3334_v8  ;;  %2958 = vmatmul.mubr.msk.f32.vlgmr.msra.gmra.mxu0 %vm21_vm0, %v2771_v6 }
 0x42c   :  { %2961 = vmatpush3.xpose.msk.msra.mxu1 %vm21_vm0, %v2774_v7  ;;  %2962 = vmatprep.mubr.msk.f32.mxu1 %vm3153_vm1, %v3152_v2 }
 0x42d   :  { %2967 = vmatprep.mubr.msk.f32.mxu0 %vm3153_vm1, %v3152_v2  ;;  %2970 = vmatprep.subr.mxu1 %v3152_v2 }
 0x42e   :  { %2966 = vmatpush3.msra.mxu0 %v2775_v21 }
 0x42f   :  { %2963 = vmatmul.mubr.msk.f32.vlgmr.msra.gmra.mxu1 %vm21_vm0, %v2772_v9  ;;  %2975 = vmatprep.subr.mxu0 %v3152_v2 }
 0x430   :  { %2972 = vmatprep.mubr.msk.f32.mxu1 %vm3153_vm1, %v3152_v2  ;;  %2971 = vmatpush3.msra.mxu1 %v2776_v22 }
 0x431   :  { %2980 = vmatprep.subr.mxu1 %v3152_v2 }
 0x4e7   :  { %v3351_v10 = vpop.f32.mrf.mxu0 }
 0x4e9   :  { %v2949_v11 = vpop.f32.mrf.mxu0 }
 0x4eb   :  { %v3353_v12 = vpop.f32.mrf.mxu1  ;;  %v1106_v13 = vpop.f32.mrf.mxu0 }
 0x4ec   :  { %v1186_v14 = vsel %vm174_vm2, %v1106_v13, -inf }
 0x4ed   :  { %v2954_v15 = vpop.f32.mrf.mxu1  ;;  %1187 = vmax.xlane.f32.xlu0 %v1186_v14  ;;  %v2959_v16 = vpop.f32.mrf.mxu0 }
 0x4ef   :  { %v1182_v17 = vpop.f32.mrf.mxu1 }
 0x4f0   :  { %v1189_v18 = vsel %vm174_vm2, %v1182_v17, -inf }
 0x4f1   :  { %1190 = vmax.xlane.f32.xlu1 %v1189_v18  ;;  %v2964_v19 = vpop.f32.mrf.mxu1  ;;  %v2800_v18 = vld [vmem:[%s3617_s2 + $0x58] sm:$0xff] }
 0x576   :  { %v1188_v24 = vpop.xlane.xlu0 %1187 }
 0x577   :  { %v1192_v26 = vsub.f32 %v1106_v13, %v1188_v24 }
 0x579   :  { %v1194_v28 = vmul.f32 1.442695, %v1192_v26 }
 0x57a   :  { %v1191_v29 = vpop.xlane.xlu1 %1190 }
 0x57b   :  { %3078 = vpow2.f32 %v1194_v28  ;;  %v1193_v30 = vsub.f32 %v1182_v17, %v1191_v29  ;;  %v2799_v17 = vld [vmem:[%s3617_s2 + $0x50] sm:$0xff]  ;;  %v2809_v29 = vld [vmem:[%s3616_s1 + $0x60] sm:$0xff] }
 0x57d   :  { %v1196_v31 = vmul.f32 1.442695, %v1193_v30 }
 0x57f   :  { %3080 = vpow2.f32 %v1196_v31  ;;  %v2807_v31 = vld [vmem:[%s3615_s0 + $0x60] sm:$0xff] }
 0x588   :  { %v3368_v33 = vpop.eup %3078 }
 0x589   :  { %2968 = vmatmul.mubr.msk.f32.vlgmr.msra.gmra.mxu0 %vm174_vm2, %v3368_v33 }
 0x58a   :  { %2976 = vmatpush3.xpose.msk.msra.mxu0 %vm21_vm0, %v2785_v32  ;;  %2977 = vmatprep.mubr.msk.f32.mxu0 %vm3153_vm1, %v3152_v2  ;;  %v2810_v32 = vld [vmem:[%s3616_s1 + $0x68] sm:$0xff] }
 0x58b   :  { %2985 = vmatprep.subr.mxu0 %v3152_v2 }
 0x58c   :  { %v3382_v36 = vpop.eup %3080 }
 0x58d   :  { %2973 = vmatmul.mubr.msk.f32.vlgmr.msra.gmra.mxu1 %vm174_vm2, %v3382_v36  ;;  %2978 = vmatmul.mubr.msk.f32.vlgmr.msra.gmra.mxu0 %vm21_vm0, %v2783_v34 }
 0x58e   :  { %2981 = vmatpush3.xpose.msk.msra.mxu1 %vm21_vm0, %v2786_v35  ;;  %2982 = vmatprep.mubr.msk.f32.mxu1 %vm3153_vm1, %v3152_v2  ;;  %v2808_v35 = vld [vmem:[%s3615_s0 + $0x68] sm:$0xff] }
 0x58f   :  { %2987 = vmatprep.mubr.msk.f32.mxu0 %vm3153_vm1, %v3152_v2  ;;  %2990 = vmatprep.subr.mxu1 %v3152_v2 }
 0x590   :  { %2986 = vmatpush3.msra.mxu0 %v2787_v52 }
 0x591   :  { %2983 = vmatmul.mubr.msk.f32.vlgmr.msra.gmra.mxu1 %vm21_vm0, %v2784_v37  ;;  %2995 = vmatprep.subr.mxu0 %v3152_v2 }
 0x592   :  { %2992 = vmatprep.mubr.msk.f32.mxu1 %vm3153_vm1, %v3152_v2  ;;  %2991 = vmatpush3.msra.mxu1 %v2788_v53  ;;  %v2811_v53 = vld [vmem:[%s3617_s2 + $0x60] sm:$0xff] }
 0x593   :  { %3000 = vmatprep.subr.mxu1 %v3152_v2 }
 0x649   :  { %v3399_v38 = vpop.f32.mrf.mxu0 }
 0x64b   :  { %v2969_v39 = vpop.f32.mrf.mxu0 }
 0x64d   :  { %v3401_v40 = vpop.f32.mrf.mxu1  ;;  %v1446_v41 = vpop.f32.mrf.mxu0 }
 0x64e   :  { %v1526_v42 = vsel %vm174_vm2, %v1446_v41, -inf }
 0x64f   :  { %v2974_v43 = vpop.f32.mrf.mxu1  ;;  %1527 = vmax.xlane.f32.xlu0 %v1526_v42  ;;  %v2979_v45 = vpop.f32.mrf.mxu0 }
 0x651   :  { %v1522_v46 = vpop.f32.mrf.mxu1 }
 0x652   :  { %v1529_v48 = vsel %vm174_vm2, %v1522_v46, -inf }
 0x653   :  { %1530 = vmax.xlane.f32.xlu1 %v1529_v48  ;;  %v2984_v50 = vpop.f32.mrf.mxu1 }
 0x6d8   :  { %v1528_v54 = vpop.xlane.xlu0 %1527 }
 0x6d9   :  { %v1532_v55 = vsub.f32 %v1446_v41, %v1528_v54  ;;  %v2812_v54 = vld [vmem:[%s3617_s2 + $0x68] sm:$0xff] }
 0x6db   :  { %v1534_v56 = vmul.f32 1.442695, %v1532_v55 }
 0x6dc   :  { %v1531_v57 = vpop.xlane.xlu1 %1530 }
 0x6dd   :  { %3082 = vpow2.f32 %v1534_v56  ;;  %v1533_v58 = vsub.f32 %v1522_v46, %v1531_v57 }
 0x6df   :  { %v1536_v59 = vmul.f32 1.442695, %v1533_v58 }
 0x6e1   :  { %3084 = vpow2.f32 %v1536_v59 }
 0x6ea   :  { %v3416_v61 = vpop.eup %3082 }
 0x6eb   :  { %2988 = vmatmul.mubr.msk.f32.vlgmr.msra.gmra.mxu0 %vm174_vm2, %v3416_v61 }
 0x6ec   :  { %2996 = vmatpush3.xpose.msk.msra.mxu0 %vm21_vm0, %v2797_v60  ;;  %2997 = vmatprep.mubr.msk.f32.mxu0 %vm3153_vm1, %v3152_v2 }
 0x6ed   :  { %3005 = vmatprep.subr.mxu0 %v3152_v2 }
 0x6ee   :  { %v3430_v0 = vpop.eup %3084 }
 0x6ef   :  { %2993 = vmatmul.mubr.msk.f32.vlgmr.msra.gmra.mxu1 %vm174_vm2, %v3430_v0  ;;  %2998 = vmatmul.mubr.msk.f32.vlgmr.msra.gmra.mxu0 %vm21_vm0, %v2795_v62  ;;  %v2821_v62 = vld [vmem:[%s3616_s1 + $0x70] sm:$0xff] }
 0x6f0   :  { %3001 = vmatpush3.xpose.msk.msra.mxu1 %vm21_vm0, %v2798_v63  ;;  %3002 = vmatprep.mubr.msk.f32.mxu1 %vm3153_vm1, %v3152_v2 }
 0x6f1   :  { %3007 = vmatprep.mubr.msk.f32.mxu0 %vm3153_vm1, %v3152_v2  ;;  %3010 = vmatprep.subr.mxu1 %v3152_v2 }
 0x6f2   :  { %3006 = vmatpush3.msra.mxu0 %v2799_v17 }
 0x6f3   :  { %3003 = vmatmul.mubr.msk.f32.vlgmr.msra.gmra.mxu1 %vm21_vm0, %v2796_v1  ;;  %3015 = vmatprep.subr.mxu0 %v3152_v2  ;;  %v2819_v1 = vld [vmem:[%s3615_s0 + $0x70] sm:$0xff] }
 0x6f4   :  { %3012 = vmatprep.mubr.msk.f32.mxu1 %vm3153_vm1, %v3152_v2  ;;  %3011 = vmatpush3.msra.mxu1 %v2800_v18 }
 0x6f5   :  { %3020 = vmatprep.subr.mxu1 %v3152_v2 }
 0x7ab   :  { %v3447_v3 = vpop.f32.mrf.mxu0 }
 0x7ad   :  { %v2989_v4 = vpop.f32.mrf.mxu0 }
 0x7ae   :  { %v2822_v4 = vld [vmem:[%s3616_s1 + $0x78] sm:$0xff] }
 0x7af   :  { %v3449_v6 = vpop.f32.mrf.mxu1  ;;  %v1786_v7 = vpop.f32.mrf.mxu0 }
 0x7b0   :  { %v1866_v9 = vsel %vm174_vm2, %v1786_v7, -inf }
 0x7b1   :  { %v2994_v11 = vpop.f32.mrf.mxu1  ;;  %1867 = vmax.xlane.f32.xlu0 %v1866_v9  ;;  %v2999_v13 = vpop.f32.mrf.mxu0  ;;  %v2820_v9 = vld [vmem:[%s3615_s0 + $0x78] sm:$0xff] }
 0x7b3   :  { %v1862_v14 = vpop.f32.mrf.mxu1 }
 0x7b4   :  { %v1869_v15 = vsel %vm174_vm2, %v1862_v14, -inf }
 0x7b5   :  { %1870 = vmax.xlane.f32.xlu1 %v1869_v15  ;;  %v3004_v16 = vpop.f32.mrf.mxu1 }
 0x83a   :  { %v1868_v19 = vpop.xlane.xlu0 %1867 }
 0x83b   :  { %v1872_v21 = vsub.f32 %v1786_v7, %v1868_v19 }
 0x83d   :  { %v1874_v22 = vmul.f32 1.442695, %v1872_v21 }
 0x83e   :  { %v1871_v24 = vpop.xlane.xlu1 %1870 }
 0x83f   :  { %3086 = vpow2.f32 %v1874_v22  ;;  %v1873_v26 = vsub.f32 %v1862_v14, %v1871_v24  ;;  %v333_v22 = vsel %vm174_vm2, %v3224_v20, 0.0  ;;  %v2824_v20 = vld [vmem:[%s3617_s2 + $0x78] sm:$0xff] }
 0x841   :  { %v1876_v28 = vmul.f32 1.442695, %v1873_v26  ;;  %v664_v26 = vsel %vm174_vm2, %v3272_v44, 0.0 }
 0x843   :  { %3088 = vpow2.f32 %v1876_v28  ;;  %v667_v28 = vsel %vm174_vm2, %v3286_v47, 0.0 }
 0x84c   :  { %v3464_v30 = vpop.eup %3086 }
 0x84d   :  { %3008 = vmatmul.mubr.msk.f32.vlgmr.msra.gmra.mxu0 %vm174_vm2, %v3464_v30 }
 0x84e   :  { %3016 = vmatpush3.xpose.msk.msra.mxu0 %vm21_vm0, %v2809_v29  ;;  %3017 = vmatprep.mubr.msk.f32.mxu0 %vm3153_vm1, %v3152_v2  ;;  %v2823_v29 = vld [vmem:[%s3617_s2 + $0x70] sm:$0xff]  ;;  %s3154_s2 = smov 4  }
 0x84f   :  { %3025 = vmatprep.subr.mxu0 %v3152_v2 }
 0x850   :  { %v3478_v34 = vpop.eup %3088 }
 0x851   :  { %3013 = vmatmul.mubr.msk.f32.vlgmr.msra.gmra.mxu1 %vm174_vm2, %v3478_v34  ;;  %3018 = vmatmul.mubr.msk.f32.vlgmr.msra.gmra.mxu0 %vm21_vm0, %v2807_v31 }
 0x852   :  { %3021 = vmatpush3.xpose.msk.msra.mxu1 %vm21_vm0, %v2810_v32  ;;  %3022 = vmatprep.mubr.msk.f32.mxu1 %vm3153_vm1, %v3152_v2 }
 0x853   :  { %3027 = vmatprep.mubr.msk.f32.mxu0 %vm3153_vm1, %v3152_v2  ;;  %3030 = vmatprep.subr.mxu1 %v3152_v2 }
 0x854   :  { %3026 = vmatpush3.msra.mxu0 %v2811_v53 }
 0x855   :  { %3023 = vmatmul.mubr.msk.f32.vlgmr.msra.gmra.mxu1 %vm21_vm0, %v2808_v35  ;;  %3035 = vmatprep.subr.mxu0 %v3152_v2 }
 0x856   :  { %3032 = vmatprep.mubr.msk.f32.mxu1 %vm3153_vm1, %v3152_v2  ;;  %3031 = vmatpush3.msra.mxu1 %v2812_v54 }
 0x857   :  { %3040 = vmatprep.subr.mxu1 %v3152_v2 }
 0x90d   :  { %v3495_v37 = vpop.f32.mrf.mxu0 }
 0x90f   :  { %v3009_v39 = vpop.f32.mrf.mxu0 }
 0x911   :  { %v3497_v41 = vpop.f32.mrf.mxu1  ;;  %v2126_v42 = vpop.f32.mrf.mxu0 }
 0x912   :  { %v2206_v43 = vsel %vm174_vm2, %v2126_v42, -inf }
 0x913   :  { %v3014_v45 = vpop.f32.mrf.mxu1  ;;  %2207 = vmax.xlane.f32.xlu0 %v2206_v43  ;;  %v3019_v46 = vpop.f32.mrf.mxu0 }
 0x915   :  { %v2202_v48 = vpop.f32.mrf.mxu1 }
 0x916   :  { %v2209_v50 = vsel %vm174_vm2, %v2202_v48, -inf }
 0x917   :  { %2210 = vmax.xlane.f32.xlu1 %v2209_v50  ;;  %v3024_v52 = vpop.f32.mrf.mxu1 }
 0x99c   :  { %v2208_v55 = vpop.xlane.xlu0 %2207 }
 0x99d   :  { %v2212_v56 = vsub.f32 %v2126_v42, %v2208_v55 }
 0x99f   :  { %v2214_v57 = vmul.f32 1.442695, %v2212_v56 }
 0x9a0   :  { %v2211_v58 = vpop.xlane.xlu1 %2210 }
 0x9a1   :  { %3090 = vpow2.f32 %v2214_v57  ;;  %v2213_v59 = vsub.f32 %v2202_v48, %v2211_v58 }
 0x9a3   :  { %v2216_v60 = vmul.f32 1.442695, %v2213_v59  ;;  %v1004_v59 = vsel %vm174_vm2, %v3320_v5, 0.0 }
 0x9a5   :  { %3092 = vpow2.f32 %v2216_v60 }
 0x9ae   :  { %v3512_v63 = vpop.eup %3090 }
 0x9af   :  { %3028 = vmatmul.mubr.msk.f32.vlgmr.msra.gmra.mxu0 %vm174_vm2, %v3512_v63 }
 0x9b0   :  { %3036 = vmatpush3.xpose.msk.msra.mxu0 %vm21_vm0, %v2821_v62  ;;  %3037 = vmatprep.mubr.msk.f32.mxu0 %vm3153_vm1, %v3152_v2 }
 0x9b1   :  { %3045 = vmatprep.subr.mxu0 %v3152_v2 }
 0x9b2   :  { %v3526_v7 = vpop.eup %3092 }
 0x9b3   :  { %3033 = vmatmul.mubr.msk.f32.vlgmr.msra.gmra.mxu1 %vm174_vm2, %v3526_v7  ;;  %3038 = vmatmul.mubr.msk.f32.vlgmr.msra.gmra.mxu0 %vm21_vm0, %v2819_v1 }
 0x9b4   :  { %3041 = vmatpush3.xpose.msk.msra.mxu1 %vm21_vm0, %v2822_v4  ;;  %3042 = vmatprep.mubr.msk.f32.mxu1 %vm3153_vm1, %v3152_v2 }
 0x9b5   :  { %3047 = vmatprep.mubr.msk.f32.mxu0 %vm3153_vm1, %v3152_v2  ;;  %3050 = vmatprep.subr.mxu1 %v3152_v2 }
 0x9b6   :  { %3046 = vmatpush3.msra.mxu0 %v2823_v29 }
 0x9b7   :  { %3043 = vmatmul.mubr.msk.f32.vlgmr.msra.gmra.mxu1 %vm21_vm0, %v2820_v9 }
 0x9b8   :  { %3052 = vmatprep.mubr.msk.f32.mxu1 %vm3153_vm1, %v3152_v2  ;;  %v336_v2 = vsel %vm174_vm2, %v3238_v23, 0.0  ;;  %3051 = vmatpush3.msra.mxu1 %v2824_v20 }
 0xa6f   :  { %v3543_v11 = vpop.f32.mrf.mxu0 }
 0xa71   :  { %v3029_v13 = vpop.f32.mrf.mxu0 }
 0xa73   :  { %v3545_v14 = vpop.f32.mrf.mxu1  ;;  %v2466_v15 = vpop.f32.mrf.mxu0 }
 0xa74   :  { %v2546_v16 = vsel %vm174_vm2, %v2466_v15, -inf }
 0xa75   :  { %v3034_v17 = vpop.f32.mrf.mxu1  ;;  %2547 = vmax.xlane.f32.xlu0 %v2546_v16  ;;  %v3039_v18 = vpop.f32.mrf.mxu0  ;;  %v1344_v16 = vsel %vm174_vm2, %v3368_v33, 0.0  ;;  %v2024_v33 = vsel %vm174_vm2, %v3464_v30, 0.0 }
 0xa76   :  { %v1687_v17 = vsel %vm174_vm2, %v3430_v0, 0.0  ;;  %v1684_v18 = vsel %vm174_vm2, %v3416_v61, 0.0  ;;  %v2364_v0 = vsel %vm174_vm2, %v3512_v63, 0.0 }
 0xa77   :  { %v2542_v19 = vpop.f32.mrf.mxu1 }
 0xa78   :  { %v2549_v21 = vsel %vm174_vm2, %v2542_v19, -inf }
 0xa79   :  { %2550 = vmax.xlane.f32.xlu1 %v2549_v21  ;;  %v3044_v24 = vpop.f32.mrf.mxu1  ;;  %334 = vadd.xlane.f32.xlu0 %v333_v22 }
 0xa7d   :  { %337 = vadd.xlane.f32.xlu1 %v336_v2  ;;  %665 = vadd.xlane.f32.xlu0 %v664_v26 }
 0xa81   :  { %668 = vadd.xlane.f32.xlu1 %v667_v28 }
 0xafe   :  { %v2548_v23 = vpop.xlane.xlu0 %2547 }
 0xaff   :  { %v2552_v31 = vsub.f32 %v2466_v15, %v2548_v23 }
 0xb01   :  { %v2554_v32 = vmul.f32 1.442695, %v2552_v31 }
 0xb02   :  { %v2551_v44 = vpop.xlane.xlu1 %2550  ;;  %v335_v35 = vpop.xlane.xlu0 %334 }
 0xb03   :  { %3094 = vpow2.f32 %v2554_v32  ;;  %v2553_v39 = vsub.f32 %v2542_v19, %v2551_v44 }
 0xb04   :  { %3096 = vrcp.f32 %v335_v35 }
 0xb05   :  { %v2556_v47 = vmul.f32 1.442695, %v2553_v39 }
 0xb06   :  { %v338_v42 = vpop.xlane.xlu1 %337  ;;  %v666_v43 = vpop.xlane.xlu0 %665 }
 0xb07   :  { %3098 = vpow2.f32 %v2556_v47 }
 0xb08   :  { %3100 = vrcp.f32 %v338_v42 }
 0xb09   :  { %3102 = vrcp.f32 %v666_v43 }
 0xb0a   :  { %v669_v45 = vpop.xlane.xlu1 %668 }
 0xb0b   :  { %3104 = vrcp.f32 %v669_v45 }
 0xb10   :  { %v3095_v46 = vpop.eup %3094 }
 0xb11   :  { %v3097_v48 = vpop.eup %3096  ;;  %3048 = vmatmul.mubr.msk.f32.vlgmr.msra.gmra.mxu0 %vm174_vm2, %v3095_v46  ;;  %v2704_v61 = vsel %vm174_vm2, %v3095_v46, 0.0 }
 0xb12   :  { %v341_v50 = vmul.f32 %v3097_v48, %v3255_v25  ;;  %v1007_v25 = vsel %vm174_vm2, %v3334_v8, 0.0 }
 0xb14   :  { %v3099_v52 = vpop.eup %3098  ;;  %343 = vst.msk [vmem:[#allocation2] sm:$0xff] %vm21_vm0, %v341_v50 }
 0xb15   :  { %v3101_v53 = vpop.eup %3100  ;;  %3053 = vmatmul.mubr.msk.f32.vlgmr.msra.gmra.mxu1 %vm174_vm2, %v3099_v52  ;;  %v2707_v19 = vsel %vm174_vm2, %v3099_v52, 0.0 }
 0xb16   :  { %v3103_v54 = vpop.eup %3102  ;;  %v342_v55 = vmul.f32 %v3101_v53, %v3257_v27 }
 0xb17   :  { %v672_v56 = vmul.f32 %v3103_v54, %v3303_v49 }
 0xb18   :  { %v3105_v57 = vpop.eup %3104  ;;  %344 = vst.msk [vmem:[#allocation2 + $0x8] sm:$0xff] %vm21_vm0, %v342_v55 }
 0xb19   :  { %676 = vrot.lane.b32.xlu0 %v672_v56, %s3154_s2  ;;  %v673_v58 = vmul.f32 %v3105_v57, %v3305_v51 }
 0xb1b   :  { %678 = vrot.lane.b32.xlu1 %v673_v58, %s3154_s2 }
 0xb38   :  { %1008 = vadd.xlane.f32.xlu0 %v1007_v25 }
 0xb3f   :  { %1005 = vadd.xlane.f32.xlu1 %v1004_v59 }
 0xb8b   :  { %v677_v27 = vpop.permute.xlu0 %676 }
 0xb8c   :  { %683 = vst.msk [vmem:[#allocation2] sm:$0xff] %vm682_vm3, %v677_v27 }
 0xb8d   :  { %v679_v49 = vpop.permute.xlu1 %678 }
 0xb8e   :  { %684 = vst.msk [vmem:[#allocation2 + $0x8] sm:$0xff] %vm682_vm3, %v679_v49 }
 0xbc1   :  { %v1009_v60 = vpop.xlane.xlu0 %1008 }
 0xbc2   :  { %3106 = vrcp.f32 %v1009_v60 }
 0xbc8   :  { %v1006_v62 = vpop.xlane.xlu1 %1005 }
 0xbc9   :  { %3108 = vrcp.f32 %v1006_v62 }
 0xbcf   :  { %v3107_v1 = vpop.eup %3106 }
 0xbd0   :  { %v1013_v51 = vmul.f32 %v3107_v1, %v3353_v12  ;;  %v1347_v12 = vsel %vm174_vm2, %v3382_v36, 0.0  ;;  %v2367_v36 = vsel %vm174_vm2, %v3526_v7, 0.0 }
 0xbd1   :  { %v3576_v4 = vpop.f32.mrf.mxu0 }
 0xbd2   :  { %1018 = vrot.lane.b32.xlu1 %v1013_v51, %s3155_s25 }
 0xbd3   :  { %v3049_v8 = vpop.f32.mrf.mxu0 }
 0xbd5   :  { %v3579_v5 = vpop.f32.mrf.mxu1 }
 0xbd6   :  { %v3109_v9 = vpop.eup %3108 }
 0xbd7   :  { %v3054_v13 = vpop.f32.mrf.mxu1  ;;  %v1012_v15 = vmul.f32 %v3109_v9, %v3351_v10  ;;  %v2027_v10 = vsel %vm174_vm2, %v3478_v34, 0.0 }
 0xbd9   :  { %1016 = vrot.lane.b32.xlu0 %v1012_v15, %s3155_s25 }
 0xbf6   :  { %1345 = vadd.xlane.f32.xlu1 %v1344_v16 }
 0xbf8   :  { %1348 = vadd.xlane.f32.xlu0 %v1347_v12 }
 0xbfa   :  { %1688 = vadd.xlane.f32.xlu1 %v1687_v17 }
 0xbfc   :  { %1685 = vadd.xlane.f32.xlu0 %v1684_v18 }
 0xbfe   :  { %2028 = vadd.xlane.f32.xlu1 %v2027_v10 }
 0xc00   :  { %2025 = vadd.xlane.f32.xlu0 %v2024_v33 }
 0xc02   :  { %2368 = vadd.xlane.f32.xlu1 %v2367_v36 }
 0xc04   :  { %2365 = vadd.xlane.f32.xlu0 %v2364_v0 }
 0xc06   :  { %2708 = vadd.xlane.f32.xlu1 %v2707_v19 }
 0xc08   :  { %2705 = vadd.xlane.f32.xlu0 %v2704_v61 }
 0xc44   :  { %v1019_v34 = vpop.permute.xlu1 %1018 }
 0xc45   :  { %1024 = vst.msk [vmem:[#allocation2 + $0x8] sm:$0xff] %vm1022_vm4, %v1019_v34 }
 0xc4b   :  { %v1017_v21 = vpop.permute.xlu0 %1016 }
 0xc4c   :  { %1023 = vst.msk [vmem:[#allocation2] sm:$0xff] %vm1022_vm4, %v1017_v21 }
 0xc7f   :  { %v1346_v30 = vpop.xlane.xlu1 %1345 }
 0xc80   :  { %3110 = vrcp.f32 %v1346_v30 }
 0xc81   :  { %v1349_v22 = vpop.xlane.xlu0 %1348 }
 0xc82   :  { %3112 = vrcp.f32 %v1349_v22 }
 0xc83   :  { %v1689_v7 = vpop.xlane.xlu1 %1688 }
 0xc85   :  { %v1686_v24 = vpop.xlane.xlu0 %1685 }
 0xc86   :  { %3114 = vrcp.f32 %v1686_v24 }
 0xc87   :  { %v2029_v63 = vpop.xlane.xlu1 %2028  ;;  %3116 = vrcp.f32 %v1689_v7 }
 0xc89   :  { %v2026_v2 = vpop.xlane.xlu0 %2025 }
 0xc8a   :  { %3118 = vrcp.f32 %v2026_v2 }
 0xc8b   :  { %v2369_v26 = vpop.xlane.xlu1 %2368  ;;  %3120 = vrcp.f32 %v2029_v63 }
 0xc8d   :  { %v3111_v28 = vpop.eup %3110  ;;  %v2366_v29 = vpop.xlane.xlu0 %2365 }
 0xc8e   :  { %3122 = vrcp.f32 %v2366_v29  ;;  %v1352_v20 = vmul.f32 %v3111_v28, %v3399_v38 }
 0xc8f   :  { %v3113_v23 = vpop.eup %3112  ;;  %3124 = vrcp.f32 %v2369_v26  ;;  %v2709_v32 = vpop.xlane.xlu1 %2708 }
 0xc90   :  { %1356 = vrot.lane.b32.xlu0 %v1352_v20, %s3156_s26  ;;  %v1353_v31 = vmul.f32 %v3113_v23, %v3401_v40 }
 0xc91   :  { %v2706_v44 = vpop.xlane.xlu0 %2705 }
 0xc92   :  { %3126 = vrcp.f32 %v2706_v44  ;;  %1358 = vrot.lane.b32.xlu1 %v1353_v31, %s3156_s26 }
 0xc93   :  { %v3115_v35 = vpop.eup %3114  ;;  %3128 = vrcp.f32 %v2709_v32 }
 0xc94   :  { %v1692_v39 = vmul.f32 %v3115_v35, %v3447_v3  ;;  %v3117_v47 = vpop.eup %3116 }
 0xc95   :  { %v1693_v38 = vmul.f32 %v3117_v47, %v3449_v6 }
 0xc96   :  { %1696 = vrot.lane.b32.xlu1 %v1692_v39, %s3157_s27 }
 0xc97   :  { %v3119_v42 = vpop.eup %3118 }
 0xc98   :  { %v2032_v43 = vmul.f32 %v3119_v42, %v3495_v37  ;;  %v3121_v45 = vpop.eup %3120 }
 0xc99   :  { %v2033_v46 = vmul.f32 %v3121_v45, %v3497_v41 }
 0xc9a   :  { %1698 = vrot.lane.b32.xlu1 %v1693_v38, %s3157_s27  ;;  %2036 = vrot.lane.b32.xlu0 %v2032_v43, %s3158_s28 }
 0xc9b   :  { %v3123_v40 = vpop.eup %3122 }
 0xc9c   :  { %v2372_v48 = vmul.f32 %v3123_v40, %v3543_v11  ;;  %v3125_v50 = vpop.eup %3124 }
 0xc9d   :  { %v2373_v52 = vmul.f32 %v3125_v50, %v3545_v14 }
 0xc9e   :  { %2038 = vrot.lane.b32.xlu1 %v2033_v46, %s3158_s28  ;;  %2376 = vrot.lane.b32.xlu0 %v2372_v48, %s3159_s29 }
 0xc9f   :  { %v3127_v3 = vpop.eup %3126 }
 0xca0   :  { %v2712_v6 = vmul.f32 %v3127_v3, %v3576_v4  ;;  %v3129_v53 = vpop.eup %3128 }
 0xca1   :  { %v2713_v37 = vmul.f32 %v3129_v53, %v3579_v5 }
 0xca2   :  { %2378 = vrot.lane.b32.xlu1 %v2373_v52, %s3159_s29  ;;  %2716 = vrot.lane.b32.xlu0 %v2712_v6, %s3160_s30 }
 0xca6   :  { %2718 = vrot.lane.b32.xlu1 %v2713_v37, %s3160_s30 }
 0xd02   :  { %v1357_v41 = vpop.permute.xlu0 %1356 }
 0xd03   :  { %1363 = vst.msk [vmem:[#allocation2] sm:$0xff] %vm1362_vm5, %v1357_v41 }
 0xd04   :  { %v1359_v11 = vpop.permute.xlu1 %1358 }
 0xd05   :  { %1364 = vst.msk [vmem:[#allocation2 + $0x8] sm:$0xff] %vm1362_vm5, %v1359_v11 }
 0xd08   :  { %v1697_v54 = vpop.permute.xlu1 %1696 }
 0xd09   :  { %1703 = vst.msk [vmem:[#allocation2] sm:$0xff] %vm1702_vm6, %v1697_v54 }
 0xd0c   :  { %v1699_v55 = vpop.permute.xlu1 %1698  ;;  %v2037_v14 = vpop.permute.xlu0 %2036 }
 0xd0d   :  { %1704 = vst.msk [vmem:[#allocation2 + $0x8] sm:$0xff] %vm1702_vm6, %v1699_v55 }
 0xd0e   :  { %2043 = vst.msk [vmem:[#allocation2] sm:$0xff] %vm2042_vm7, %v2037_v14 }
 0xd10   :  { %v2039_v56 = vpop.permute.xlu1 %2038  ;;  %v2377_v57 = vpop.permute.xlu0 %2376 }
 0xd11   :  { %2044 = vst.msk [vmem:[#allocation2 + $0x8] sm:$0xff] %vm2042_vm7, %v2039_v56 }
 0xd12   :  { %2383 = vst.msk [vmem:[#allocation2] sm:$0xff] %vm2382_vm8, %v2377_v57 }
 0xd14   :  { %v2379_v58 = vpop.permute.xlu1 %2378  ;;  %v2717_v25 = vpop.permute.xlu0 %2716 }
 0xd15   :  { %2384 = vst.msk [vmem:[#allocation2 + $0x8] sm:$0xff] %vm2382_vm8, %v2379_v58 }
 0xd16   :  { %2723 = vst.msk [vmem:[#allocation2] sm:$0xff] %vm2722_vm9, %v2717_v25 }
 0xd18   :  { %v2719_v59 = vpop.permute.xlu1 %2718 }
 0xd19   :  { %2724 = vst.msk [vmem:[#allocation2 + $0x8] sm:$0xff] %vm2722_vm9, %v2719_v59 }
 0xd1a   :  { %3141 = shalt.err (!%p3138_p4)
}
 0xd1b   :  { %s3162_s7 = smov 128  }
 0xd1c   :  { %2736 = dma.vmem_to_hbm [thread:$0]  %s2731_s5, 256, %s3618_s3, [#allocation3], %s3162_s7, %s3162_s7, %s3155_s25  }
 0xd1d   :  { %3150 = dma.done.wait [#allocation3], 256  }
 0xd1e   :  { %3151 = vsyncadd [#allocation3], 4294967040 }
 0xd1f   :  { %2740 = vsyncpa [#allocation3], 1 }

</bundles_post_ra>
